<compile_context>
chip_gen: v7x
topology: tpu7x:2x2x1
jax: 0.10.0
libtpu: 0.0.40
codegen_flags: <defaults>
</compile_context>

<pallas_src>
import functools

import jax
import jax.numpy as jnp
from jax.experimental import pallas as pl
from jax.experimental.pallas import tpu as pltpu


# --------------------------------------------------------------------------- #
# Kernel
# --------------------------------------------------------------------------- #
def _concat_skip_kernel(x_ref, w_ref, b_ref, o_ref):
    # x_ref: (b_tile, Cin, TS)   w_ref: (Cout, Cin)   b_ref: (Cout, 1)
    # o_ref: (b_tile, Cin + Cout, TS)       TS = spatial tile on the lane axis
    b_tile, cin, _ = x_ref.shape
    w = w_ref[...]          # hoisted: resident across the (small) batch loop
    b = b_ref[...]
    # b_tile is a small static constant (capped in the wrapper), so a static
    # Python loop is a cheap unroll the LLO scheduler can see through.
    for bi in range(b_tile):
        xb = x_ref[bi]                                   # (Cin, TS)
        # Skip branch: straight slice-store into the first Cin channel rows.
        o_ref[bi, :cin, :] = xb
        # 1x1 conv branch on the MXU, f32 accumulation.
        y = jnp.dot(w, xb, preferred_element_type=jnp.float32) + b
        o_ref[bi, cin:, :] = y.astype(o_ref.dtype)


# --------------------------------------------------------------------------- #
# Tile selection
# --------------------------------------------------------------------------- #
_LANE_CAP = 32 * 1024      # cap spatial tile (lanes) so big images keep >=2 grid steps
_BATCH_UNROLL_CAP = 32     # cap for the static batch-fold unroll inside the kernel


def _largest_divisor_leq(n, cap):
    cap = max(1, min(n, cap))
    for d in range(cap, 0, -1):
        if n % d == 0:
            return d
    return 1


def _pick_tiles(n, hw, cin, cout, itemsize, vmem_budget_bytes=8 << 20):
    """Pick (b_tile, tile_s).

    b_tile always divides n.  tile_s is either the full hw (small images) or a
    128-multiple, preferably one that divides hw exactly (no masked tail).
    Budget accounts for double-buffered input + output blocks.
    """
    bytes_per_col = (2 * cin + cout) * itemsize * 2          # in+out, double-buffered
    target_cols = (vmem_budget_bytes // bytes_per_col) // 128 * 128
    target_cols = max(128, min(_LANE_CAP, target_cols))

    if hw <= target_cols:
        # Whole image fits in one lane tile -> fold batch images into the step.
        tile_s = hw
        by_vmem = max(1, int(vmem_budget_bytes // (bytes_per_col * hw)))
        b_tile = _largest_divisor_leq(n, min(by_vmem, _BATCH_UNROLL_CAP))
    else:
        b_tile = 1
        tile_s = 0
        if hw % 128 == 0:
            # Prefer a 128-multiple that divides hw exactly (lane-dense, no tail).
            for cand in range(target_cols, 0, -128):
                if hw % cand == 0:
                    tile_s = cand
                    break
        if tile_s == 0:
            # Fall back to near-equal blocks so the tail block is never nearly empty.
            nblk = pl.cdiv(hw, target_cols)
            tile_s = max(128, (hw // nblk) // 128 * 128)

    # Keep at least 2 grid steps when possible so both v7x TensorCores get work.
    if (n // b_tile) * pl.cdiv(hw, tile_s) < 2 and b_tile > 1:
        b_tile = _largest_divisor_leq(n, b_tile // 2)
    return b_tile, tile_s


# --------------------------------------------------------------------------- #
# Wrapper
# --------------------------------------------------------------------------- #
@functools.partial(jax.jit, static_argnames=("tile_s", "b_tile"))
def concat_skip_conn(x_nchw, weight, bias, *, tile_s=None, b_tile=None):
    """out = cat([x, conv1x1(x)], dim=1).

    x: (N, Cin, H, W), weight: (Cout, Cin), bias: (Cout,).
    """
    n, cin, h, w = x_nchw.shape
    cout = weight.shape[0]
    hw = h * w
    itemsize = x_nchw.dtype.itemsize

    auto_b, auto_s = _pick_tiles(n, hw, cin, cout, itemsize)
    if tile_s is None:
        tile_s = auto_s
    if b_tile is None:
        b_tile = auto_b

    x3d = x_nchw.reshape(n, cin, hw)                 # free reshape, no HBM round trip
    b2d = bias.reshape(cout, 1).astype(jnp.float32)  # keep bias/accum in f32

    # Explicit VMEM limit: actual double-buffered block bytes + headroom,
    # clamped so it is always safe on v5e (16 MiB scoped default) and under
    # v7x's 64 MiB physical VMEM.
    block_bytes = b_tile * (cin + (cin + cout)) * tile_s * itemsize
    vmem_limit = int(block_bytes * 2 * 1.5) + (1 << 20)
    vmem_limit = min(max(vmem_limit, 4 << 20), 32 << 20)

    cost = pl.CostEstimate(
        flops=2 * n * hw * cin * cout,
        transcendentals=0,
        bytes_accessed=(2 * cin + cout) * n * hw * itemsize,
    )

    out3d = pl.pallas_call(
        _concat_skip_kernel,
        out_shape=jax.ShapeDtypeStruct((n, cin + cout, hw), x_nchw.dtype),
        grid_spec=pltpu.PrefetchScalarGridSpec(
            num_scalar_prefetch=0,
            grid=(n // b_tile, pl.cdiv(hw, tile_s)),
            in_specs=[
                pl.BlockSpec((b_tile, cin, tile_s), lambda i, s: (i, 0, s)),
                pl.BlockSpec((cout, cin), lambda i, s: (0, 0)),   # weight resident
                pl.BlockSpec((cout, 1), lambda i, s: (0, 0)),     # bias resident
            ],
            out_specs=pl.BlockSpec((b_tile, cin + cout, tile_s),
                                   lambda i, s: (i, 0, s)),
        ),
        compiler_params=pltpu.CompilerParams(
            dimension_semantics=("parallel", "parallel"),
            vmem_limit_bytes=vmem_limit,
        ),
        cost_estimate=cost,
    )(x3d, weight, b2d)

    return out3d.reshape(n, cin + cout, h, w)


# --------------------------------------------------------------------------- #
# Reference + smoke test
# --------------------------------------------------------------------------- #
def _reference(x_nchw, weight, bias):
    # pure-JAX reference of torch.cat([x, Conv2d_1x1(x)], dim=1)
    y = jnp.einsum("nchw,oc->nohw", x_nchw, weight) + bias[None, :, None, None]
    return jnp.concatenate([x_nchw, y], axis=1)


if __name__ == "__main__":
    key = jax.random.PRNGKey(0)
    k_x, k_w, k_b, k_x2 = jax.random.split(key, 4)

    # Primary case (matches the module's expected small shapes).
    N, CIN, H, W = 2, 4, 16, 16
    COUT = 4
    x = jax.random.normal(k_x, (N, CIN, H, W), dtype=jnp.float32)
    weight = jax.random.normal(k_w, (COUT, CIN), dtype=jnp.float32) * 0.1
    bias = jax.random.normal(k_b, (COUT,), dtype=jnp.float32) * 0.1

    out = jax.block_until_ready(concat_skip_conn(x, weight, bias))
    ref = _reference(x, weight, bias)
    assert out.shape == (N, CIN + COUT, H, W), out.shape
    assert jnp.allclose(out, ref, atol=1e-5, rtol=1e-5), "mismatch vs reference"

    # Second case exercises the batch-fold path (b_tile > 1, tiny images).
    x2 = jax.random.normal(k_x2, (4, CIN, 8, 8), dtype=jnp.float32)
    out2 = jax.block_until_ready(concat_skip_conn(x2, weight, bias))
    ref2 = _reference(x2, weight, bias)
    assert jnp.allclose(out2, ref2, atol=1e-5, rtol=1e-5), "mismatch vs reference (batch-fold)"

    print("KERNEL_OK")
</pallas_src>

<mosaic_0001>
module attributes {stable_mosaic.version = 11 : i64} {
  func.func @_concat_skip_kernel(%arg0: i32, %arg1: i32, %arg2: memref<1x4x256xf32, #tpu.memory_space<vmem>>, %arg3: memref<4x4xf32, #tpu.memory_space<vmem>>, %arg4: memref<4x1xf32, #tpu.memory_space<vmem>>, %arg5: memref<1x8x256xf32, #tpu.memory_space<vmem>>) attributes {dimension_semantics = [#tpu.dimension_semantics<parallel>, #tpu.dimension_semantics<parallel>], iteration_bounds = array<i64: 2, 1>, scalar_prefetch = 0 : i64, scratch_operands = 0 : i64, tpu.core_type = #tpu.core_type<tc>, window_params = [{transform_indices = @transform_0, window_bounds = array<i64: 1, 4, 256>}, {pipeline_mode = #tpu.pipeline_mode<synchronous>, transform_indices = @transform_1, window_bounds = array<i64: 4, 4>}, {pipeline_mode = #tpu.pipeline_mode<synchronous>, transform_indices = @transform_2, window_bounds = array<i64: 4, 1>}, {transform_indices = @transform_3, window_bounds = array<i64: 1, 8, 256>}]} {
    %c0 = arith.constant 0 : index
    %c0_0 = arith.constant 0 : index
    %0 = vector.load %arg3[%c0, %c0_0] : memref<4x4xf32, #tpu.memory_space<vmem>>, vector<4x4xf32>
    %c0_1 = arith.constant 0 : index
    %c0_2 = arith.constant 0 : index
    %1 = vector.load %arg4[%c0_1, %c0_2] : memref<4x1xf32, #tpu.memory_space<vmem>>, vector<4x1xf32>
    %c0_3 = arith.constant 0 : index
    %c0_4 = arith.constant 0 : index
    %c0_5 = arith.constant 0 : index
    %2 = vector.load %arg2[%c0_3, %c0_4, %c0_5] : memref<1x4x256xf32, #tpu.memory_space<vmem>>, vector<1x4x256xf32>
    %3 = vector.shape_cast %2 : vector<1x4x256xf32> to vector<4x256xf32>
    %c0_6 = arith.constant 0 : index
    %c0_7 = arith.constant 0 : index
    %c0_8 = arith.constant 0 : index
    %4 = vector.load %arg5[%c0_6, %c0_7, %c0_8] : memref<1x8x256xf32, #tpu.memory_space<vmem>>, vector<1x4x256xf32>
    %5 = vector.shape_cast %4 : vector<1x4x256xf32> to vector<4x256xf32>
    %6 = vector.shape_cast %3 : vector<4x256xf32> to vector<1x4x256xf32>
    tpu.vector_store %arg5[%c0_6, %c0_7, %c0_8], %6 {strides = array<i32>} : memref<1x8x256xf32, #tpu.memory_space<vmem>>, vector<1x4x256xf32>,
    %cst = arith.constant dense<0.000000e+00> : vector<4x256xf32>
    %7 = tpu.matmul %0, %3, %cst {dimension_numbers = #tpu.dot_dimension_numbers<[1], [0], [0], [1], [0, 0, 1, 1], [], []>} : vector<4x4xf32>, vector<4x256xf32>, vector<4x256xf32> -> vector<4x256xf32>
    %8 = vector.broadcast %1 : vector<4x1xf32> to vector<4x256xf32>
    %9 = arith.addf %7, %8 : vector<4x256xf32>
    %c0_9 = arith.constant 0 : index
    %c4 = arith.constant 4 : index
    %c0_10 = arith.constant 0 : index
    %10 = vector.load %arg5[%c0_9, %c4, %c0_10] : memref<1x8x256xf32, #tpu.memory_space<vmem>>, vector<1x4x256xf32>
    %11 = vector.shape_cast %10 : vector<1x4x256xf32> to vector<4x256xf32>
    %12 = vector.shape_cast %9 : vector<4x256xf32> to vector<1x4x256xf32>
    tpu.vector_store %arg5[%c0_9, %c4, %c0_10], %12 {strides = array<i32>} : memref<1x8x256xf32, #tpu.memory_space<vmem>>, vector<1x4x256xf32>,
    return
  }
  func.func @transform_0(%arg0: i32, %arg1: i32) -> (i32, i32, i32) {
    %c0_i32 = arith.constant 0 : i32
    %c0_i32_0 = arith.constant 0 : i32
    return %arg0, %c0_i32, %arg1 : i32, i32, i32
  }
  func.func @transform_1(%arg0: i32, %arg1: i32) -> (i32, i32) {
    %c0_i32 = arith.constant 0 : i32
    %c0_i32_0 = arith.constant 0 : i32
    %c0_i32_1 = arith.constant 0 : i32
    return %c0_i32, %c0_i32_0 : i32, i32
  }
  func.func @transform_2(%arg0: i32, %arg1: i32) -> (i32, i32) {
    %c0_i32 = arith.constant 0 : i32
    %c0_i32_0 = arith.constant 0 : i32
    %c0_i32_1 = arith.constant 0 : i32
    return %c0_i32, %c0_i32_0 : i32, i32
  }
  func.func @transform_3(%arg0: i32, %arg1: i32) -> (i32, i32, i32) {
    %c0_i32 = arith.constant 0 : i32
    %c0_i32_0 = arith.constant 0 : i32
    return %arg0, %c0_i32, %arg1 : i32, i32, i32
  }
}

</mosaic_0001>

<bundles_post_ra>
// kernel: concat_skip_conn.1
= control target key start
LH: loop header
LB: loop body
LE: loop exit
PB: predicated region body
PF: predicated region fallthrough
CT: control target
= control target key end

     0   :  { %s488_s12 = smov 0   ;;  %s490_s13 = smov 0   ;;  %s527_s0 = inlined_call_operand.vmem [shape: f32[2,4,256], index: 0, kind: input, shape index: {}]   ;;  %s528_s1 = inlined_call_operand.vmem [shape: f32[4,4], index: 1, kind: input, shape index: {}]   ;;  %s529_s2 = inlined_call_operand.vmem [shape: f32[4,1], index: 2, kind: input, shape index: {}]   ;;  %s530_s3 = inlined_call_operand.vmem [shape: f32[2,8,256], index: 3, kind: output, shape index: {}]  }
   0x1   :  { %s492_s14 = smov 0  }
   0x2 LB: > { %s25_s15 = sadd.s32 1, %s460_s13  ;;  %p402_p0 = scmp.ge.s32.totalorder %s464_s14, 1  ;;  %s464_s14 = sphi %s492_s14, %s13_s14   ;;  %s460_s13 = sphi %s490_s13, %s532_s13   ;;  %s456_s12 = sphi %s488_s12, %s531_s12  }
   0x3   : > { %p27_p1 = scmp.ge.s32.totalorder %s25_s15, 2  ;;  %p158_p2 = scmp.lt.s32.totalorder %s464_s14, 3 }
   0x5   : > { %s534_s15 = smov (%p27_p1, %s25_s15), 0  ;;  %p159_p3 = pnand %p402_p0, %p158_p2 }
   0x6   : > { %p191_p4 = scmp.lt.s32.totalorder (!%p159_p3), %s456_s12, 1  ;;  %v466_v0 = vmov (!%p159_p3), 0.0   ;;  %v211_v1 = vld [vmem:[%s529_s2] sm:$0xf] (!%p159_p3)  ;;  %v467_v2 = vmov (!%p159_p3), 0   ;;  %vm227_vm0 = vcmask (!%p159_p3), 1043456  }
   0x7   : > { %162 = sbr.rel (%p159_p3) target bundleno = 240 (0xf0), region = 32  ;;  %296 = vmatprep.mubr.f32.mxu0 (!%p159_p3), %v466_v0  ;;  %440 = vset.pattern.permute.xlu0 (!%p159_p3), %v467_v2  ;;  %v210_v5 = vld [vmem:[%s528_s1] sm:$0xf] (!%p159_p3)  ;;  %vm223_vm1 = vcmask (!%p159_p3), 31744  }
   0x8   : > { %220 = vperm.xlu0 (!%p159_p3), %440, %v211_v1  }
   0xe   : > { %s536_s12 = smov (!%p191_p4, %s456_s12), 1 }
   0xf   : > { %s412_s18 = sshll.u32 %s536_s12, 3  ;;  %s413_s19 = sshll.u32 %s536_s12, 4 }
  0x10   : > { %s198_s22 = scalar_lea.vmem %s527_s0, %s412_s18  ;;  %s208_s25 = scalar_lea.vmem %s530_s3, %s413_s19 }
  0x11   : > { %v212_v3 = vld [vmem:[%s198_s22] sm:$0xff] }
  0x12   : > { %v214_v4 = vcombine.high %v212_v3, %v212_v3  ;;  %216 = vst [vmem:[%s208_s25] sm:$0xf] %v212_v3 }
  0x14   : > { %217 = vst [vmem:[%s208_s25 + $0x8] sm:$0xf] %v214_v4  ;;  %407 = vmatprep.subr.msk.mxu0 %vm227_vm0, %v214_v4 }
  0x15   : > { %408 = vmatpush1.msk.msra.mxu0 %vm227_vm0, %v212_v3 }
  0x16   : > { %409 = vmatmul.mubr.msk.f32.vlgmr.msra.gmra.mrb[0].mxu0 %vm223_vm1, %v210_v5 }
  0x87   : > { %v221_v6 = vpop.permute.xlu0 %220 }
  0xe9   : > { %v298_v7 = vpop.f32.mrb[0].mxu0 }
  0xea   : > { %v299_v8 = vadd.f32 %v298_v7, %v221_v6  ;;  %v300_v9 = vpop.f32.mrb[1].mxu0 }
  0xeb   : > { %v301_v10 = vadd.f32 %v300_v9, %v221_v6 }
  0xec   : > { %v305_v11 = vrot.slane %v299_v8, 4 }
  0xed   : > { %v306_v12 = vrot.slane %v301_v10, 4 }
  0xee   : > { %309 = vst [vmem:[%s208_s25] sm:$0xf0] %v305_v11 }
  0xef   : > { %310 = vst [vmem:[%s208_s25 + $0x8] sm:$0xf0] %v306_v12 }
  0xf0 PF: > { %s13_s14 = sadd.s32 1, %s464_s14   ;;  %s531_s12 = smov %s460_s13 }
  0xf1   : > { %p10_p5 = scmp.ge.s32.totalorder %s13_s14, 4   ;;  %s532_s13 = smov %s534_s15 }
  0xf3   :  { %12 = sbr.rel (!%p10_p5) target bundleno = 2 (0x2), region = 62 }

</bundles_post_ra>
